<compile_context>
chip_gen: v5e
topology: v5e:2x2
jax: 0.10.0
libtpu: 0.0.40
codegen_flags: <defaults>
</compile_context>

<pallas_src>
import functools
import math

import jax
import jax.numpy as jnp
from jax.experimental import pallas as pl
from jax.experimental.pallas import tpu as pltpu


NEG_BIG = -1e30  # mask_value in Cal_M.forward


def _round_up(x, m):
    return ((x + m - 1) // m) * m


def _static_pow(x, power):
    """x ** power for a static python `power`.

    Exact repeated squaring for small integer powers (stays on the VPU and is
    bit-reproducible against the pure-JAX reference); jnp.power otherwise.
    """
    p = float(power)
    if p.is_integer() and 1.0 <= p <= 64.0:
        n = int(p)
        result = None
        base = x
        while n:
            if n & 1:
                result = base if result is None else result * base
            n >>= 1
            if n:
                base = base * base
        return result
    return jnp.power(x, p)


def _modes_from_mu(mu, min_step, max_step):
    """TSPStepWarp modes: softmax([0, mu]) -> cumsum -> drop last -> clamp."""
    bsz = mu.shape[0]
    z = jnp.concatenate([jnp.zeros((bsz, 1), mu.dtype), mu], axis=1)
    probs = jax.nn.softmax(z, axis=1)
    return jnp.clip(jnp.cumsum(probs, axis=1)[:, :-1], min_step, max_step)


# ---------------------------------------------------------------------------
# Kernel 1: Cal_M masked attention pooling over time (online softmax) -> mu
# ---------------------------------------------------------------------------
def _mu_kernel(x_ref, mask_ref, w1_ref, b1_ref, w2_ref, wr_ref, br_ref,
               mu_ref, m_s, l_s, acc_s):
    lt = pl.program_id(1)

    @pl.when(lt == 0)
    def _init():
        m_s[...] = jnp.full(m_s.shape, -jnp.inf, m_s.dtype)
        l_s[...] = jnp.zeros(l_s.shape, l_s.dtype)
        acc_s[...] = jnp.zeros(acc_s.shape, acc_s.dtype)

    x = x_ref[0].astype(jnp.float32)        # (TILE_L, dim)  native-dtype DMA
    msk = mask_ref[0].astype(jnp.float32)   # (TILE_L, 1)

    # attn = Linear(dim, 2*dim) -> Tanh -> Linear(2*dim, K-1, bias=False)
    h1 = jnp.dot(x, w1_ref[...], preferred_element_type=jnp.float32) + b1_ref[...]
    t1 = jnp.tanh(h1)
    logits = jnp.dot(t1, w2_ref[...], preferred_element_type=jnp.float32)  # (TILE_L, Km)
    s = msk * logits + (1.0 - msk) * NEG_BIG

    # Online softmax over the time axis (per output column k).
    m_prev = m_s[...]                                              # (1, Km)
    m_new = jnp.maximum(m_prev, jnp.max(s, axis=0, keepdims=True))
    alpha = jnp.exp(m_prev - m_new)
    p = jnp.exp(s - m_new)                                         # (TILE_L, Km)
    l_s[...] = alpha * l_s[...] + jnp.sum(p, axis=0, keepdims=True)
    # acc[d, k] += sum_t x[t, d] * p[t, k]    (numerator of h^T @ softmax(attn))
    acc_s[...] = alpha * acc_s[...] + jax.lax.dot_general(
        x, p, (((0,), (0,)), ((), ())), preferred_element_type=jnp.float32)
    m_s[...] = m_new

    @pl.when(lt == pl.num_programs(1) - 1)
    def _finalize():
        pooled = acc_s[...] / l_s[...]                             # (dim, Km)
        # reduce_d: degenerate (dim -> 1) matvec done on the VPU, not the MXU.
        mu = jnp.sum(pooled * wr_ref[...], axis=0, keepdims=True) + br_ref[...]
        mu_ref[0] = mu.astype(mu_ref.dtype)


# ---------------------------------------------------------------------------
# Kernel 2: TSP CDF -> gamma -> gamma_scaled + alignment matrix (time on lanes)
# ---------------------------------------------------------------------------
def _resample_kernel(modes_ref, gs_ref, almat_ref, *, seq_len, tile_l, width,
                     power, interp):
    m = modes_ref[0].astype(jnp.float32)                  # (Km, 1)
    a = jnp.clip(m - width * 0.5, 0.0, 1.0 - width)       # (Km, 1)
    b = jnp.clip(a + width, width, 1.0)                   # (Km, 1)

    lt = pl.program_id(1)
    t = jax.lax.broadcasted_iota(jnp.float32, (1, tile_l), 1)
    t = t + (lt * tile_l).astype(jnp.float32)
    x = t * (1.0 / (seq_len - 1.0))                       # == linspace(0,1,L)[t]

    left = (m - a) / (b - a) * _static_pow(
        jnp.clip((x - a) / (m - a), 0.0, 1.0), power)
    right = 1.0 - (b - m) / (b - a) * _static_pow(
        jnp.clip((b - x) / (b - m), 0.0, 1.0), power)
    cdf = jnp.where(x <= m, left, right)                  # (Km, TILE_L)

    n_steps = modes_ref.shape[1]
    original_len = n_steps + 1
    gamma = jnp.sum(cdf, axis=0, keepdims=True) * (1.0 / n_steps)  # (1, TILE_L)
    gs = gamma * (original_len - 1.0)
    gs_ref[0] = gs.astype(gs_ref.dtype)                   # lane-dense store

    k = jax.lax.broadcasted_iota(jnp.float32, (original_len, 1), 0)  # (K, 1)
    if interp == "linear":
        resp = jnp.maximum(1.0 - jnp.abs(gs - k), 0.0)
    elif interp == "integer":
        resp = (jnp.floor(gs + 0.5) == k).astype(jnp.float32)
    else:
        raise ValueError("unknown interpolation kernel, try 'integer' or 'linear'")
    almat_ref[0] = resp.astype(almat_ref.dtype)           # lane-dense store


# ---------------------------------------------------------------------------
# Wrapper
# ---------------------------------------------------------------------------
def almtx_forward(input_seq, mask, params, *, K, width=0.125, power=16.0,
                  min_step=1e-4, max_step=0.9999, kernel="linear",
                  test_bound=False, tile_l=512):
    """Almtx.forward: returns (gamma_scaled, almat); + (modes, mu) if test_bound."""
    if kernel not in ("linear", "integer"):
        raise ValueError("unknown interpolation kernel, try 'integer' or 'linear'")
    B, L, dim = input_seq.shape
    Km = K - 1
    hid = 2 * dim

    assert tile_l % 128 == 0, "tile_l must be a multiple of 128"
    TILE_L = min(tile_l, _round_up(L, 128))
    Lp = _round_up(L, TILE_L)
    n_lt = Lp // TILE_L

    # Tail-tile handling: pad time to a whole number of tiles; padded steps are
    # masked out of the attention softmax and sliced off the final outputs.
    pad = Lp - L
    mask_f = mask.astype(jnp.float32)
    if pad:
        x_p = jnp.pad(input_seq, ((0, 0), (0, pad), (0, 0)))
        mask_p = jnp.pad(mask_f, ((0, 0), (0, pad)))
    else:
        x_p, mask_p = input_seq, mask_f
    mask3 = mask_p[..., None]                              # (B, Lp, 1)

    # Torch Linear weights are (out, in); move to (in, out) for y = x @ W.
    w1 = params["attn0_w"].T.astype(jnp.float32)           # (dim, 2*dim)
    b1 = params["attn0_b"].reshape(1, hid).astype(jnp.float32)
    w2 = params["attn2_w"].T.astype(jnp.float32)           # (2*dim, Km)
    wr = params["reduce_w"].reshape(dim, 1).astype(jnp.float32)
    br = params["reduce_b"].reshape(1, 1).astype(jnp.float32)

    vmem_limit = 32 * 1024 * 1024  # > v5e 16 MiB default scope, < v7x 64 MiB phys

    # ---- Kernel 1: Cal_M attention pooling -> mu (B, 1, Km) -----------------
    mu3 = pl.pallas_call(
        _mu_kernel,
        out_shape=jax.ShapeDtypeStruct((B, 1, Km), jnp.float32),
        grid_spec=pltpu.PrefetchScalarGridSpec(
            num_scalar_prefetch=0,
            grid=(B, n_lt),
            in_specs=[
                pl.BlockSpec((1, TILE_L, dim), lambda bi, li: (bi, li, 0)),
                pl.BlockSpec((1, TILE_L, 1), lambda bi, li: (bi, li, 0)),
                pl.BlockSpec((dim, hid), lambda bi, li: (0, 0)),
                pl.BlockSpec((1, hid), lambda bi, li: (0, 0)),
                pl.BlockSpec((hid, Km), lambda bi, li: (0, 0)),
                pl.BlockSpec((dim, 1), lambda bi, li: (0, 0)),
                pl.BlockSpec((1, 1), lambda bi, li: (0, 0)),
            ],
            out_specs=pl.BlockSpec((1, 1, Km), lambda bi, li: (bi, 0, 0)),
            scratch_shapes=[
                pltpu.VMEM((1, Km), jnp.float32),    # running max
                pltpu.VMEM((1, Km), jnp.float32),    # running denominator
                pltpu.VMEM((dim, Km), jnp.float32),  # running numerator
            ],
        ),
        compiler_params=pltpu.CompilerParams(
            dimension_semantics=("parallel", "arbitrary"),
            vmem_limit_bytes=vmem_limit),
    )(x_p, mask3, w1, b1, w2, wr, br)
    mu = mu3[:, 0, :]                                      # (B, Km)

    # ---- modes (O(B*K), plain JAX between the kernels) ----------------------
    modes = _modes_from_mu(mu, min_step, max_step)         # (B, Km)

    # ---- Kernel 2: warp + resampling responsibilities -----------------------
    kern2 = functools.partial(_resample_kernel, seq_len=L, tile_l=TILE_L,
                              width=float(width), power=float(power),
                              interp=kernel)
    gs3, almat_t = pl.pallas_call(
        kern2,
        out_shape=(
            jax.ShapeDtypeStruct((B, 1, Lp), jnp.float32),   # gamma_scaled
            jax.ShapeDtypeStruct((B, K, Lp), jnp.float32),   # almat, time on lanes
        ),
        grid_spec=pltpu.PrefetchScalarGridSpec(
            num_scalar_prefetch=0,
            grid=(B, n_lt),
            in_specs=[pl.BlockSpec((1, Km, 1), lambda bi, li: (bi, 0, 0))],
            out_specs=[
                pl.BlockSpec((1, 1, TILE_L), lambda bi, li: (bi, 0, li)),
                pl.BlockSpec((1, K, TILE_L), lambda bi, li: (bi, 0, li)),
            ],
        ),
        compiler_params=pltpu.CompilerParams(
            dimension_semantics=("parallel", "parallel"),
            vmem_limit_bytes=vmem_limit),
    )(modes[:, :, None])

    gamma_scaled = gs3[:, 0, :L]                           # (B, L)
    almat = jnp.swapaxes(almat_t[:, :, :L], 1, 2)          # (B, L, K) module layout

    if test_bound:
        return gamma_scaled, almat, modes, mu
    return gamma_scaled, almat


# ---------------------------------------------------------------------------
# Pure-JAX references (mirror the PyTorch forward)
# ---------------------------------------------------------------------------
def _cal_m_ref(h, mask, params):
    w1 = params["attn0_w"].astype(jnp.float32)
    b1 = params["attn0_b"].astype(jnp.float32)
    w2 = params["attn2_w"].astype(jnp.float32)
    wr = params["reduce_w"].astype(jnp.float32)
    br = params["reduce_b"].astype(jnp.float32)
    hf = h.astype(jnp.float32)
    t = jnp.tanh(jnp.einsum("bld,hd->blh", hf, w1, precision="highest") + b1)
    attn = jnp.einsum("blh,kh->blk", t, w2, precision="highest")
    m3 = mask.astype(jnp.float32)[..., None]
    attn = m3 * attn + (1.0 - m3) * NEG_BIG
    attn = jax.nn.softmax(attn, axis=-2)
    pooled = jnp.einsum("bld,blk->bkd", hf, attn, precision="highest")
    return jnp.einsum("bkd,d->bk", pooled, wr[0], precision="highest") + br[0]


def _resample_from_modes_ref(modes, seq_len, K, width, power, interp="linear"):
    n_steps = modes.shape[1]
    m = modes[:, :, None].astype(jnp.float32)
    a = jnp.clip(m - width * 0.5, 0.0, 1.0 - width)
    b = jnp.clip(a + width, width, 1.0)
    x = (jnp.arange(seq_len, dtype=jnp.float32) * (1.0 / (seq_len - 1.0)))[None, None, :]
    left = (m - a) / (b - a) * _static_pow(jnp.clip((x - a) / (m - a), 0.0, 1.0), power)
    right = 1.0 - (b - m) / (b - a) * _static_pow(jnp.clip((b - x) / (b - m), 0.0, 1.0), power)
    cdf = jnp.where(x <= m, left, right)
    gamma = jnp.sum(cdf, axis=1) / n_steps
    gs = gamma * (K - 1.0)
    k = jnp.arange(K, dtype=jnp.float32)[None, None, :]
    if interp == "linear":
        almat = jnp.maximum(1.0 - jnp.abs(gs[..., None] - k), 0.0)
    else:
        almat = (jnp.floor(gs[..., None] + 0.5) == k).astype(jnp.float32)
    return gs, almat


if __name__ == "__main__":
    B, L, dim, K = 2, 256, 32, 8
    width, power = 0.125, 16.0
    min_step, max_step = 1e-4, 0.9999

    key = jax.random.PRNGKey(0)
    kx, k1, k2, k3, k4, k5 = jax.random.split(key, 6)

    def uinit(k, shape, fan_in):
        bound = 1.0 / math.sqrt(fan_in)
        return jax.random.uniform(k, shape, jnp.float32, -bound, bound)

    params = {
        # Cal_M.attn = Linear(dim, 2*dim) -> Tanh -> Linear(2*dim, K-1, no bias)
        "attn0_w": uinit(k1, (2 * dim, dim), dim),
        "attn0_b": uinit(k2, (2 * dim,), dim),
        "attn2_w": uinit(k3, (K - 1, 2 * dim), 2 * dim),
        # Cal_M.reduce_d = Linear(dim, 1)
        "reduce_w": uinit(k4, (1, dim), dim),
        "reduce_b": uinit(k5, (1,), dim),
    }

    x = jax.random.normal(kx, (B, L, dim), jnp.float32)
    mask = jnp.ones((B, L), jnp.float32).at[1, 200:].set(0.0)  # ragged 2nd sequence

    # tile_l=128 -> two time tiles at L=256, exercising the online-softmax
    # accumulation and the tiled lane-dense stores (production default is 512).
    gamma_scaled, almat, modes, mu = almtx_forward(
        x, mask, params, K=K, width=width, power=power,
        min_step=min_step, max_step=max_step, kernel="linear",
        test_bound=True, tile_l=128)
    jax.block_until_ready((gamma_scaled, almat, modes, mu))

    # Check 1 (tight): warp + alignment stage vs. reference driven by the same
    # modes -- validates kernel 2 and the TSP/almat math.
    ref_gs, ref_almat = _resample_from_modes_ref(modes, L, K, width, power, "linear")
    assert jnp.allclose(gamma_scaled, ref_gs, atol=1e-4, rtol=1e-4), \
        float(jnp.max(jnp.abs(gamma_scaled - ref_gs)))
    assert jnp.allclose(almat, ref_almat, atol=1e-4, rtol=1e-4), \
        float(jnp.max(jnp.abs(almat - ref_almat)))

    # Check 2: Cal_M pooling (kernel 1) vs. pure-JAX reference.  Tolerance
    # leaves headroom for MXU pass-count / transcendental rounding differences;
    # typical on-device agreement is ~1e-5.
    ref_mu = _cal_m_ref(x, mask, params)
    ref_modes = _modes_from_mu(ref_mu, min_step, max_step)
    assert jnp.allclose(mu, ref_mu, atol=2e-3, rtol=2e-3), \
        float(jnp.max(jnp.abs(mu - ref_mu)))
    assert jnp.allclose(modes, ref_modes, atol=2e-3, rtol=2e-3), \
        float(jnp.max(jnp.abs(modes - ref_modes)))

    print("KERNEL_OK")
</pallas_src>

<mosaic_0001>
module attributes {stable_mosaic.version = 11 : i64} {
  func.func @_mu_kernel(%arg0: i32, %arg1: i32, %arg2: memref<1x128x32xf32, #tpu.memory_space<vmem>>, %arg3: memref<1x128x1xf32, #tpu.memory_space<vmem>>, %arg4: memref<32x64xf32, #tpu.memory_space<vmem>>, %arg5: memref<1x64xf32, #tpu.memory_space<vmem>>, %arg6: memref<64x7xf32, #tpu.memory_space<vmem>>, %arg7: memref<32x1xf32, #tpu.memory_space<vmem>>, %arg8: memref<1x1xf32, #tpu.memory_space<vmem>>, %arg9: memref<1x1x7xf32, #tpu.memory_space<vmem>>, %arg10: memref<1x7xf32, #tpu.memory_space<vmem>>, %arg11: memref<1x7xf32, #tpu.memory_space<vmem>>, %arg12: memref<32x7xf32, #tpu.memory_space<vmem>>) attributes {dimension_semantics = [#tpu.dimension_semantics<parallel>, #tpu.dimension_semantics<arbitrary>], iteration_bounds = array<i64: 2, 2>, scalar_prefetch = 0 : i64, scratch_operands = 3 : i64, tpu.core_type = #tpu.core_type<tc>, window_params = [{transform_indices = @transform_0, window_bounds = array<i64: 1, 128, 32>}, {transform_indices = @transform_1, window_bounds = array<i64: 1, 128, 1>}, {pipeline_mode = #tpu.pipeline_mode<synchronous>, transform_indices = @transform_2, window_bounds = array<i64: 32, 64>}, {pipeline_mode = #tpu.pipeline_mode<synchronous>, transform_indices = @transform_3, window_bounds = array<i64: 1, 64>}, {pipeline_mode = #tpu.pipeline_mode<synchronous>, transform_indices = @transform_4, window_bounds = array<i64: 64, 7>}, {pipeline_mode = #tpu.pipeline_mode<synchronous>, transform_indices = @transform_5, window_bounds = array<i64: 32, 1>}, {pipeline_mode = #tpu.pipeline_mode<synchronous>, transform_indices = @transform_6, window_bounds = array<i64: 1, 1>}, {transform_indices = @transform_7, window_bounds = array<i64: 1, 1, 7>}]} {
    %c0_i32 = arith.constant 0 : i32
    %0 = arith.cmpi eq, %arg1, %c0_i32 : i32
    %1 = arith.extui %0 : i1 to i32
    %c0_i32_0 = arith.constant 0 : i32
    %2 = arith.cmpi ne, %1, %c0_i32_0 : i32
    scf.if %2 {
      %cst_31 = arith.constant 0xFF800000 : f32
      %48 = vector.broadcast %cst_31 : f32 to vector<1x7xf32>
      %c0_32 = arith.constant 0 : index
      %c0_33 = arith.constant 0 : index
      %49 = vector.load %arg10[%c0_32, %c0_33] : memref<1x7xf32, #tpu.memory_space<vmem>>, vector<1x7xf32>
      tpu.vector_store %arg10[%c0_32, %c0_33], %48 {strides = array<i32>} : memref<1x7xf32, #tpu.memory_space<vmem>>, vector<1x7xf32>,
      %cst_34 = arith.constant 0.000000e+00 : f32
      %50 = vector.broadcast %cst_34 : f32 to vector<1x7xf32>
      %c0_35 = arith.constant 0 : index
      %c0_36 = arith.constant 0 : index
      %51 = vector.load %arg11[%c0_35, %c0_36] : memref<1x7xf32, #tpu.memory_space<vmem>>, vector<1x7xf32>
      tpu.vector_store %arg11[%c0_35, %c0_36], %50 {strides = array<i32>} : memref<1x7xf32, #tpu.memory_space<vmem>>, vector<1x7xf32>,
      %cst_37 = arith.constant 0.000000e+00 : f32
      %52 = vector.broadcast %cst_37 : f32 to vector<32x7xf32>
      %c0_38 = arith.constant 0 : index
      %c0_39 = arith.constant 0 : index
      %53 = vector.load %arg12[%c0_38, %c0_39] : memref<32x7xf32, #tpu.memory_space<vmem>>, vector<32x7xf32>
      tpu.vector_store %arg12[%c0_38, %c0_39], %52 {strides = array<i32>} : memref<32x7xf32, #tpu.memory_space<vmem>>, vector<32x7xf32>,
    } else {
    }
    %c0 = arith.constant 0 : index
    %c0_1 = arith.constant 0 : index
    %c0_2 = arith.constant 0 : index
    %3 = vector.load %arg2[%c0, %c0_1, %c0_2] : memref<1x128x32xf32, #tpu.memory_space<vmem>>, vector<1x128x32xf32>
    %4 = vector.shape_cast %3 : vector<1x128x32xf32> to vector<128x32xf32>
    %c0_3 = arith.constant 0 : index
    %c0_4 = arith.constant 0 : index
    %c0_5 = arith.constant 0 : index
    %5 = vector.load %arg3[%c0_3, %c0_4, %c0_5] : memref<1x128x1xf32, #tpu.memory_space<vmem>>, vector<1x128x1xf32>
    %6 = vector.shape_cast %5 : vector<1x128x1xf32> to vector<128x1xf32>
    %c0_6 = arith.constant 0 : index
    %c0_7 = arith.constant 0 : index
    %7 = vector.load %arg4[%c0_6, %c0_7] : memref<32x64xf32, #tpu.memory_space<vmem>>, vector<32x64xf32>
    %cst = arith.constant dense<0.000000e+00> : vector<128x64xf32>
    %8 = tpu.matmul %4, %7, %cst {dimension_numbers = #tpu.dot_dimension_numbers<[1], [0], [0], [1], [0, 0, 1, 1], [], []>} : vector<128x32xf32>, vector<32x64xf32>, vector<128x64xf32> -> vector<128x64xf32>
    %c0_8 = arith.constant 0 : index
    %c0_9 = arith.constant 0 : index
    %9 = vector.load %arg5[%c0_8, %c0_9] : memref<1x64xf32, #tpu.memory_space<vmem>>, vector<1x64xf32>
    %10 = vector.broadcast %9 : vector<1x64xf32> to vector<128x64xf32>
    %11 = arith.addf %8, %10 : vector<128x64xf32>
    %12 = math.tanh %11 : vector<128x64xf32>
    %c0_10 = arith.constant 0 : index
    %c0_11 = arith.constant 0 : index
    %13 = vector.load %arg6[%c0_10, %c0_11] : memref<64x7xf32, #tpu.memory_space<vmem>>, vector<64x7xf32>
    %cst_12 = arith.constant dense<0.000000e+00> : vector<128x7xf32>
    %14 = tpu.matmul %12, %13, %cst_12 {dimension_numbers = #tpu.dot_dimension_numbers<[1], [0], [0], [1], [0, 0, 1, 1], [], []>} : vector<128x64xf32>, vector<64x7xf32>, vector<128x7xf32> -> vector<128x7xf32>
    %15 = vector.broadcast %6 : vector<128x1xf32> to vector<128x7xf32>
    %16 = arith.mulf %15, %14 : vector<128x7xf32>
    %cst_13 = arith.constant 1.000000e+00 : f32
    %17 = vector.broadcast %cst_13 : f32 to vector<128x1xf32>
    %18 = arith.subf %17, %6 : vector<128x1xf32>
    %cst_14 = arith.constant -1.000000e+30 : f32
    %19 = vector.broadcast %cst_14 : f32 to vector<128x1xf32>
    %20 = arith.mulf %18, %19 : vector<128x1xf32>
    %21 = vector.broadcast %20 : vector<128x1xf32> to vector<128x7xf32>
    %22 = arith.addf %16, %21 : vector<128x7xf32>
    %c0_15 = arith.constant 0 : index
    %c0_16 = arith.constant 0 : index
    %23 = vector.load %arg10[%c0_15, %c0_16] : memref<1x7xf32, #tpu.memory_space<vmem>>, vector<1x7xf32>
    %cst_17 = arith.constant dense<0xFF800000> : vector<7xf32>
    %24 = vector.multi_reduction <maximumf>, %22, %cst_17 [0] : vector<128x7xf32> to vector<7xf32>
    %25 = vector.shape_cast %24 : vector<7xf32> to vector<1x7xf32>
    %26 = arith.maximumf %23, %25 : vector<1x7xf32>
    %27 = arith.subf %23, %26 : vector<1x7xf32>
    %28 = math.exp %27 : vector<1x7xf32>
    %29 = vector.broadcast %26 : vector<1x7xf32> to vector<128x7xf32>
    %30 = arith.subf %22, %29 : vector<128x7xf32>
    %31 = math.exp %30 : vector<128x7xf32>
    %c0_18 = arith.constant 0 : index
    %c0_19 = arith.constant 0 : index
    %32 = vector.load %arg11[%c0_18, %c0_19] : memref<1x7xf32, #tpu.memory_space<vmem>>, vector<1x7xf32>
    %33 = arith.mulf %28, %32 : vector<1x7xf32>
    %cst_20 = arith.constant dense<0.000000e+00> : vector<7xf32>
    %34 = vector.multi_reduction <add>, %31, %cst_20 [0] : vector<128x7xf32> to vector<7xf32>
    %35 = vector.shape_cast %34 : vector<7xf32> to vector<1x7xf32>
    %36 = arith.addf %33, %35 : vector<1x7xf32>
    %c0_21 = arith.constant 0 : index
    %c0_22 = arith.constant 0 : index
    %37 = vector.load %arg11[%c0_21, %c0_22] : memref<1x7xf32, #tpu.memory_space<vmem>>, vector<1x7xf32>
    tpu.vector_store %arg11[%c0_21, %c0_22], %36 {strides = array<i32>} : memref<1x7xf32, #tpu.memory_space<vmem>>, vector<1x7xf32>,
    %c0_23 = arith.constant 0 : index
    %c0_24 = arith.constant 0 : index
    %38 = vector.load %arg12[%c0_23, %c0_24] : memref<32x7xf32, #tpu.memory_space<vmem>>, vector<32x7xf32>
    %39 = vector.broadcast %28 : vector<1x7xf32> to vector<32x7xf32>
    %40 = arith.mulf %39, %38 : vector<32x7xf32>
    %cst_25 = arith.constant dense<0.000000e+00> : vector<32x7xf32>
    %41 = tpu.matmul %4, %31, %cst_25 {dimension_numbers = #tpu.dot_dimension_numbers<[0], [0], [1], [1], [0, 1, 1, 1], [], []>} : vector<128x32xf32>, vector<128x7xf32>, vector<32x7xf32> -> vector<32x7xf32>
    %42 = arith.addf %40, %41 : vector<32x7xf32>
    %c0_26 = arith.constant 0 : index
    %c0_27 = arith.constant 0 : index
    %43 = vector.load %arg12[%c0_26, %c0_27] : memref<32x7xf32, #tpu.memory_space<vmem>>, vector<32x7xf32>
    tpu.vector_store %arg12[%c0_26, %c0_27], %42 {strides = array<i32>} : memref<32x7xf32, #tpu.memory_space<vmem>>, vector<32x7xf32>,
    %c0_28 = arith.constant 0 : index
    %c0_29 = arith.constant 0 : index
    %44 = vector.load %arg10[%c0_28, %c0_29] : memref<1x7xf32, #tpu.memory_space<vmem>>, vector<1x7xf32>
    tpu.vector_store %arg10[%c0_28, %c0_29], %26 {strides = array<i32>} : memref<1x7xf32, #tpu.memory_space<vmem>>, vector<1x7xf32>,
    %c1_i32 = arith.constant 1 : i32
    %45 = arith.cmpi eq, %arg1, %c1_i32 : i32
    %46 = arith.extui %45 : i1 to i32
    %c0_i32_30 = arith.constant 0 : i32
    %47 = arith.cmpi ne, %46, %c0_i32_30 : i32
    scf.if %47 {
      %c0_31 = arith.constant 0 : index
      %c0_32 = arith.constant 0 : index
      %48 = vector.load %arg12[%c0_31, %c0_32] : memref<32x7xf32, #tpu.memory_space<vmem>>, vector<32x7xf32>
      %c0_33 = arith.constant 0 : index
      %c0_34 = arith.constant 0 : index
      %49 = vector.load %arg11[%c0_33, %c0_34] : memref<1x7xf32, #tpu.memory_space<vmem>>, vector<1x7xf32>
      %50 = vector.broadcast %49 : vector<1x7xf32> to vector<32x7xf32>
      %51 = arith.divf %48, %50 : vector<32x7xf32>
      %c0_35 = arith.constant 0 : index
      %c0_36 = arith.constant 0 : index
      %52 = vector.load %arg7[%c0_35, %c0_36] : memref<32x1xf32, #tpu.memory_space<vmem>>, vector<32x1xf32>
      %53 = vector.broadcast %52 : vector<32x1xf32> to vector<32x7xf32>
      %54 = arith.mulf %51, %53 : vector<32x7xf32>
      %cst_37 = arith.constant dense<0.000000e+00> : vector<7xf32>
      %55 = vector.multi_reduction <add>, %54, %cst_37 [0] : vector<32x7xf32> to vector<7xf32>
      %56 = vector.shape_cast %55 : vector<7xf32> to vector<1x7xf32>
      %c0_38 = arith.constant 0 : index
      %c0_39 = arith.constant 0 : index
      %57 = vector.load %arg8[%c0_38, %c0_39] : memref<1x1xf32, #tpu.memory_space<vmem>>, vector<1x1xf32>
      %58 = vector.broadcast %57 : vector<1x1xf32> to vector<1x7xf32>
      %59 = arith.addf %56, %58 : vector<1x7xf32>
      %c0_40 = arith.constant 0 : index
      %c0_41 = arith.constant 0 : index
      %c0_42 = arith.constant 0 : index
      %60 = vector.load %arg9[%c0_40, %c0_41, %c0_42] : memref<1x1x7xf32, #tpu.memory_space<vmem>>, vector<1x1x7xf32>
      %61 = vector.shape_cast %60 : vector<1x1x7xf32> to vector<1x7xf32>
      %62 = vector.shape_cast %59 : vector<1x7xf32> to vector<1x1x7xf32>
      tpu.vector_store %arg9[%c0_40, %c0_41, %c0_42], %62 {strides = array<i32>} : memref<1x1x7xf32, #tpu.memory_space<vmem>>, vector<1x1x7xf32>,
    } else {
    }
    return
  }
  func.func @transform_0(%arg0: i32, %arg1: i32) -> (i32, i32, i32) {
    %c0_i32 = arith.constant 0 : i32
    %c0_i32_0 = arith.constant 0 : i32
    return %arg0, %arg1, %c0_i32 : i32, i32, i32
  }
  func.func @transform_1(%arg0: i32, %arg1: i32) -> (i32, i32, i32) {
    %c0_i32 = arith.constant 0 : i32
    %c0_i32_0 = arith.constant 0 : i32
    return %arg0, %arg1, %c0_i32 : i32, i32, i32
  }
  func.func @transform_2(%arg0: i32, %arg1: i32) -> (i32, i32) {
    %c0_i32 = arith.constant 0 : i32
    %c0_i32_0 = arith.constant 0 : i32
    %c0_i32_1 = arith.constant 0 : i32
    return %c0_i32, %c0_i32_0 : i32, i32
  }
  func.func @transform_3(%arg0: i32, %arg1: i32) -> (i32, i32) {
    %c0_i32 = arith.constant 0 : i32
    %c0_i32_0 = arith.constant 0 : i32
    %c0_i32_1 = arith.constant 0 : i32
    return %c0_i32, %c0_i32_0 : i32, i32
  }
  func.func @transform_4(%arg0: i32, %arg1: i32) -> (i32, i32) {
    %c0_i32 = arith.constant 0 : i32
    %c0_i32_0 = arith.constant 0 : i32
    %c0_i32_1 = arith.constant 0 : i32
    return %c0_i32, %c0_i32_0 : i32, i32
  }
  func.func @transform_5(%arg0: i32, %arg1: i32) -> (i32, i32) {
    %c0_i32 = arith.constant 0 : i32
    %c0_i32_0 = arith.constant 0 : i32
    %c0_i32_1 = arith.constant 0 : i32
    return %c0_i32, %c0_i32_0 : i32, i32
  }
  func.func @transform_6(%arg0: i32, %arg1: i32) -> (i32, i32) {
    %c0_i32 = arith.constant 0 : i32
    %c0_i32_0 = arith.constant 0 : i32
    %c0_i32_1 = arith.constant 0 : i32
    return %c0_i32, %c0_i32_0 : i32, i32
  }
  func.func @transform_7(%arg0: i32, %arg1: i32) -> (i32, i32, i32) {
    %c0_i32 = arith.constant 0 : i32
    %c0_i32_0 = arith.constant 0 : i32
    %c0_i32_1 = arith.constant 0 : i32
    return %arg0, %c0_i32, %c0_i32_0 : i32, i32, i32
  }
}

</mosaic_0001>

<bundles_post_ra>
// kernel: tpu_custom_call.1
= control target key start
LH: loop header
LB: loop body
LE: loop exit
PB: predicated region body
PF: predicated region fallthrough
CT: control target
= control target key end

     0   :  { %s2107_s0 = inlined_call_operand.vmem [shape: f32[2,256,32], index: 0, kind: input, shape index: {}]   ;;  %s2108_s1 = inlined_call_operand.vmem [shape: f32[2,256,1], index: 1, kind: input, shape index: {}]   ;;  %s2109_s2 = inlined_call_operand.vmem [shape: f32[32,64], index: 2, kind: input, shape index: {}]   ;;  %s2110_s3 = inlined_call_operand.vmem [shape: f32[1,64], index: 3, kind: input, shape index: {}]   ;;  %s2111_s4 = inlined_call_operand.vmem [shape: f32[64,7], index: 4, kind: input, shape index: {}]   ;;  %s2112_s5 = inlined_call_operand.vmem [shape: f32[32,1], index: 5, kind: input, shape index: {}]   ;;  %s2113_s6 = inlined_call_operand.<no memory space> [shape: f32[1,1], index: 6, kind: input, shape index: {}]   ;;  %s2114_s7 = inlined_call_operand.hbm [shape: f32[2,1,7], index: 7, kind: output, shape index: {}]  }
   0x1   :  { %v12_v0 = vstv %s2113_s6 }
   0x2   :  { %13 = vst [vmem:[#allocation5] sm:$0x1] %v12_v0 }
   0x3   :  { %14 = vsyncpa [#allocation7], 0 }
   0x4   :  { %16 = vsyncpa [#allocation7 + $0x1], 0  ;;  %s1626_s26 = smov 0   ;;  %s1628_s27 = smov 0  }
   0x5   :  { %s1630_s28 = smov 0   ;;  %s1632_s29 = smov 0  }
   0x6   :  { %s1634_s30 = smov 0   ;;  %s1636_s8 = smov 0  }
   0x7   :  { %s1638_s9 = smov 0   ;;  %s1640_s10 = smov 0  }
   0x8 LB: > { %s1270_s6 = sadd.s32 4294967295, %s1577_s10   ;;  %s1271_s11 = sadd.s32 4294967294, %s1577_s10   ;;  %s1577_s10 = sphi %s1640_s10, %s22_s10   ;;  %s1573_s9 = sphi %s1638_s9, %s2128_s9   ;;  %s1569_s8 = sphi %s1636_s8, %s2127_s8   ;;  %s1565_s30 = sphi %s1634_s30, %s2126_s30   ;;  %s1561_s29 = sphi %s1632_s29, %s2125_s29   ;;  %s1557_s28 = sphi %s1630_s28, %s2124_s28   ;;  %s1553_s27 = sphi %s1628_s27, %s2123_s27   ;;  %s1549_s26 = sphi %s1626_s26, %s2122_s26  }
   0x9   : > { %s31_s12 = sadd.s32 1, %s1569_s8  ;;  %s34_s13 = sadd.s32 1, %s1573_s9 }
   0xa   : > { %p32_p0 = scmp.ge.s32.totalorder %s31_s12, 2  ;;  %p212_p1 = scmp.ne.s32.totalorder %s1557_s28, %s1553_s27 }
   0xb   : > { %p213_p2 = scmp.eq.s32.totalorder %s1270_s6, 3  ;;  %p218_p4 = scmp.ne.s32.totalorder %s1553_s27, %s1549_s26 }
   0xc   : > { %s2130_s12 = smov (%p32_p0, %s31_s12), 0  ;;  %s2132_s13 = smov (!%p32_p0, %s34_s13), %s1573_s9 }
   0xd   : > { %2116 = sst [smem:[#allocation9_spill]] %s2130_s12  ;;  %p1675_p3 = por %p213_p2, %p212_p1 }
   0xe   : > { %p36_p5 = scmp.ge.s32.totalorder %s2132_s13, 2  ;;  %p219_p6 = scmp.eq.s32.totalorder %s1271_s11, 3 }
   0xf   : > { %p1274_p7 = scmp.ge.s32.totalorder %s1577_s10, 1  ;;  %p278_p8 = scmp.lt.s32.totalorder %s1577_s10, 5 }
  0x10   : > { %s2134_s13 = smov (%p36_p5, %s2132_s13), 0  ;;  %p1685_p9 = por %p219_p6, %p218_p4 }
  0x11   : > { %2118 = sst [smem:[#allocation10_spill]] %s2134_s13  ;;  %p279_p10 = pnand %p1274_p7, %p278_p8 }
  0x12   : > { %s199_s16 = ssub.s32 %s1573_s9, %s2134_s13  ;;  %s202_s17 = sadd.s32 1, %s1557_s28 }
  0x13   : > { %p200_p11 = scmp.eq.s32.totalorder %s199_s16, 0  ;;  %282 = sbr.rel (%p279_p10) target bundleno = 823 (0x337), region = 48 }
  0x14   : > { %s320_s19 = sand.u32 (!%p279_p10), 1, %s1553_s27   ;;  %s1275_s20 = sshll.u32 (!%p279_p10), %s1561_s29, 4 }
  0x15   : > { %s1693_s18 = scalar_select %p200_p11, %s1557_s28, %s202_s17  }
  0x16   : > { %p323_p12 = scmp.lt.s32.totalorder (!%p279_p10), %s1565_s30, 1  ;;  %p325_p13 = scmp.lt.s32.totalorder (!%p279_p10), %s1275_s20, 31 }
  0x17   : > { %s1711_s12 = scalar_lea.vmem (!%p279_p10), [#allocation6], %s320_s19  ;;  %p1281_p0 = scmp.ne.s32.totalorder (!%p279_p10), %s1561_s29, 0 }
  0x18   : > { %s324_s21 = scalar_select %p323_p12, %s1565_s30, 1 }
  0x19   : > { %s2136_s20 = smov (!%p325_p13, %s1275_s20), 31  ;;  %345 = sbr.rel (%p1281_p0) target bundleno = 37 (0x25), region = 52 }
  0x1a   : > { %s1276_s22 = sshll.u32 %s324_s21, 5 }
  0x1b   : > { %s328_s23 = sadd.s32 %s1276_s22, %s2136_s20 }
  0x1c   : > { %s1277_s24 = sshll.u32 %s328_s23, 3 }
  0x1d   : > { %s1702_s11 = scalar_lea.vmem %s2107_s0, %s1277_s24  ;;  %s1707_s13 = scalar_lea.vmem %s2108_s1, %s1277_s24 }
  0x1e   : > { %vm346_vm0 = vcmask 49152   ;;  %vm349_vm1 = vcmask 56320   ;;  %v1579_v1 = vmov -inf   ;;  %v1580_v2 = vmov 0.0  }
  0x1f   : > { %347 = vst.msk [vmem:[#allocation2] sm:$0x1] %vm346_vm0, %v1579_v1 }
  0x20   : > { %348 = vst.msk [vmem:[#allocation3] sm:$0x1] %vm346_vm0, %v1580_v2 }
  0x21   : > { %350 = vst.msk [vmem:[#allocation4] sm:$0xff] %vm349_vm1, %v1580_v2 }
  0x22   : > { %351 = vst.msk [vmem:[#allocation4 + $0x8] sm:$0xff] %vm349_vm1, %v1580_v2 }
  0x23   : > { %352 = vst.msk [vmem:[#allocation4 + $0x10] sm:$0xff] %vm349_vm1, %v1580_v2 }
  0x24   : > { %353 = vst.msk [vmem:[#allocation4 + $0x18] sm:$0xff] %vm349_vm1, %v1580_v2 }
  0x25 PF: > { %v389_v3 = vld [vmem:[%s2109_s2 + $0x18] sm:$0xff]  ;;  %v388_v4 = vld [vmem:[%s2109_s2 + $0x10] sm:$0xff]  ;;  %v387_v5 = vld [vmem:[%s2109_s2 + $0x8] sm:$0xff]  ;;  %vm394_vm2 = vcmask 261120   ;;  %v1581_v15 = vmov 0   ;;  %vm532_vm3 = vcmask 523264  }
  0x26   : > { %455 = vmatpush.msra.mxu0 %v389_v3  ;;  %1317 = vmatpush.msra.mxu2 %v389_v3  ;;  %v386_v6 = vld [vmem:[%s2109_s2] sm:$0xff]  ;;  %v1732_v8 = vld [vmem:[%s1702_s11 + $0x8] sm:$0xff]  ;;  %v1737_v9 = vld [vmem:[%s1702_s11 + $0x10] sm:$0xff]  ;;  %vm871_vm4 = vcmask 56320   ;;  %vm1004_vm5 = vcmask 49152   ;;  %p1314_p1 = scmp.ne.s32.totalorder %s1561_s29, 1 }
  0x27   : > { %v1727_v7 = vld [vmem:[%s1702_s11] sm:$0xff]  ;;  %v1742_v10 = vld [vmem:[%s1702_s11 + $0x18] sm:$0xff]  ;;  %v1752_v12 = vld [vmem:[%s1702_s11 + $0x28] sm:$0xff]  ;;  %1408 = vset.pattern.permute.xlu1 %v1581_v15  ;;  %1407 = vset.pattern.permute.xlu0 %v1581_v15 }
  0x28   : > { %456 = vmatpush.msra.mxu0 %v388_v4  ;;  %1318 = vmatpush.msra.mxu2 %v388_v4  ;;  %v1747_v11 = vld [vmem:[%s1702_s11 + $0x20] sm:$0xff]  ;;  %v1757_v13 = vld [vmem:[%s1702_s11 + $0x50] sm:$0xff]  ;;  %v1773_v18 = vld [vmem:[%s1702_s11 + $0x58] sm:$0xff] }
  0x29   : > { %v1762_v14 = vld [vmem:[%s1707_s13 + $0x10] sm:$0xff]  ;;  %v1765_v16 = vld [vmem:[%s1707_s13] sm:$0xff]  ;;  %1409 = vset.pattern.permute.xlu2 %v1581_v15  ;;  %v531_v19 = vld [vmem:[%s2111_s4 + $0x38] sm:$0xff] }
  0x2a   : > { %457 = vmatpush.msra.mxu0 %v387_v5  ;;  %1319 = vmatpush.msra.mxu2 %v387_v5  ;;  %v1770_v17 = vld [vmem:[%s1702_s11 + $0x30] sm:$0xff]  ;;  %v1786_v21 = vld [vmem:[%s1707_s13 + $0x18] sm:$0xff]  ;;  %v371_v22 = vld [vmem:[%s1707_s13 + $0x8] sm:$0xff]  ;;  %v742_v43 = vsub.f32 1.0, %v1765_v16  ;;  %v744_v48 = vsub.f32 1.0, %v1762_v14 }
  0x2b   : > { %658 = vperm.xlu1 %1408, %v1762_v14   ;;  %648 = vperm.xlu0 %1407, %v1765_v16   ;;  %v530_v20 = vld [vmem:[%s2111_s4 + $0x30] sm:$0xff]  ;;  %v529_v23 = vld [vmem:[%s2111_s4 + $0x28] sm:$0xff]  ;;  %v1794_v24 = vld [vmem:[%s1702_s11 + $0x38] sm:$0xff]  ;;  %v743_v44 = vsub.f32 1.0, %v371_v22  ;;  %v745_v49 = vsub.f32 1.0, %v1786_v21 }
  0x2c   : > { %458 = vmatpush.msra.mxu0 %v386_v6  ;;  %1320 = vmatpush.msra.mxu2 %v386_v6  ;;  %v1797_v25 = vld [vmem:[%s1702_s11 + $0x60] sm:$0xff]  ;;  %v1807_v27 = vld [vmem:[%s1702_s11 + $0x68] sm:$0xff]  ;;  %v1817_v29 = vld [vmem:[%s1702_s11 + $0x70] sm:$0xff]  ;;  %v758_v45 = vmul.f32 -1e+30, %v742_v43 }
  0x2d   : > { %1282 = vmatmul.msk.f32.vlgmr.msra.gmra.mxu0 %vm394_vm2, %v1727_v7  ;;  %1292 = vmatmul.msk.f32.vlgmr.msra.gmra.mxu2 %vm394_vm2, %v1757_v13  ;;  %v1804_v26 = vld [vmem:[%s1702_s11 + $0x40] sm:$0xff]  ;;  %v1814_v28 = vld [vmem:[%s1702_s11 + $0x48] sm:$0xff]  ;;  %v1824_v30 = vld [vmem:[%s1702_s11 + $0x78] sm:$0xff]  ;;  %v759_v46 = vmul.f32 -1e+30, %v743_v44 }
  0x2e   : > { %589 = vmatpush.msra.mxu1 %v531_v19  ;;  %1321 = vmatpush.msra.mxu3 %v531_v19  ;;  %v374_v31 = vld [vmem:[%s1707_s13 + $0x20] sm:$0xff]  ;;  %v527_v33 = vld [vmem:[%s2111_s4 + $0x18] sm:$0xff]  ;;  %v375_v34 = vld [vmem:[%s1707_s13 + $0x28] sm:$0xff]  ;;  %v760_v51 = vmul.f32 -1e+30, %v744_v48 }
  0x2f   : > { %668 = vperm.xlu2 %1409, %v374_v31   ;;  %v528_v32 = vld [vmem:[%s2111_s4 + $0x20] sm:$0xff]  ;;  %v526_v35 = vld [vmem:[%s2111_s4 + $0x10] sm:$0xff]  ;;  %v377_v36 = vld [vmem:[%s1707_s13 + $0x38] sm:$0xff]  ;;  %v746_v50 = vsub.f32 1.0, %v374_v31  ;;  %v761_v52 = vmul.f32 -1e+30, %v745_v49 }
  0x30   : > { %590 = vmatpush.msra.mxu1 %v530_v20  ;;  %1322 = vmatpush.msra.mxu3 %v530_v20  ;;  %v376_v37 = vld [vmem:[%s1707_s13 + $0x30] sm:$0xff]  ;;  %v525_v38 = vld [vmem:[%s2111_s4 + $0x8] sm:$0xff]  ;;  %v524_v39 = vld [vmem:[%s2111_s4] sm:$0xff]  ;;  %v747_v54 = vsub.f32 1.0, %v375_v34  ;;  %v749_v55 = vsub.f32 1.0, %v377_v36 }
  0x31   : > { %v378_v40 = vld [vmem:[%s1707_s13 + $0x40] sm:$0xff]  ;;  %v1849_v41 = vld [vmem:[%s1707_s13 + $0x50] sm:$0xff]  ;;  %v379_v42 = vld [vmem:[%s1707_s13 + $0x48] sm:$0xff]  ;;  %v762_v53 = vmul.f32 -1e+30, %v746_v50  ;;  %v748_v56 = vsub.f32 1.0, %v376_v37 }
  0x32   : > { %591 = vmatpush.msra.mxu1 %v529_v23  ;;  %1323 = vmatpush.msra.mxu3 %v529_v23  ;;  %v381_v47 = vld [vmem:[%s1707_s13 + $0x58] sm:$0xff]  ;;  %v1860_v57 = vld [vmem:[%s2110_s3] ss:$0 sm:$0xff]  ;;  %v763_v58 = vmul.f32 -1e+30, %v747_v54  ;;  %v384_v3 = vld [vmem:[%s1707_s13 + $0x70] sm:$0xff] }
  0x33   : > { %663 = vperm.xlu1 %1408, %v1786_v21   ;;  %653 = vperm.xlu0 %1407, %v371_v22   ;;  %v765_v60 = vmul.f32 -1e+30, %v749_v55  ;;  %v764_v61 = vmul.f32 -1e+30, %v748_v56  ;;  %v382_v2 = vld [vmem:[%s1707_s13 + $0x60] sm:$0xff]  ;;  %v383_v4 = vld [vmem:[%s1707_s13 + $0x68] sm:$0xff] }
  0x34   : > { %592 = vmatpush.msra.mxu1 %v528_v32  ;;  %1324 = vmatpush.msra.mxu3 %v528_v32  ;;  %v751_v5 = vsub.f32 1.0, %v379_v42  ;;  %v750_v6 = vsub.f32 1.0, %v378_v40  ;;  %v385_v21 = vld [vmem:[%s1707_s13 + $0x78] sm:$0xff]  ;;  %v752_v22 = vsub.f32 1.0, %v1849_v41  ;;  %v753_v23 = vsub.f32 1.0, %v381_v47 }
  0x35   : > { %1283 = vmatmul.msk.f32.gmra.mxu0 %vm394_vm2, %v1732_v8  ;;  %1293 = vmatmul.msk.f32.gmra.mxu2 %vm394_vm2, %v1773_v18 }
  0x36   : > { %593 = vmatpush.msra.mxu1 %v527_v33  ;;  %1325 = vmatpush.msra.mxu3 %v527_v33  ;;  %v767_v14 = vmul.f32 -1e+30, %v751_v5  ;;  %v766_v16 = vmul.f32 -1e+30, %v750_v6  ;;  %v768_v31 = vmul.f32 -1e+30, %v752_v22 }
  0x37   : > { %673 = vperm.xlu2 %1409, %v375_v34   ;;  %v769_v33 = vmul.f32 -1e+30, %v753_v23 }
  0x38   : > { %594 = vmatpush.msra.mxu1 %v526_v35  ;;  %1326 = vmatpush.msra.mxu3 %v526_v35 }
  0x3a   : > { %595 = vmatpush.msra.mxu1 %v525_v38  ;;  %1327 = vmatpush.msra.mxu3 %v525_v38 }
  0x3b   : > { %683 = vperm.xlu1 %1408, %v377_v36   ;;  %678 = vperm.xlu0 %1407, %v376_v37   ;;  %v754_v36 = vsub.f32 1.0, %v382_v2  ;;  %v755_v37 = vsub.f32 1.0, %v383_v4 }
  0x3c   : > { %596 = vmatpush.msra.mxu1 %v524_v39  ;;  %1328 = vmatpush.msra.mxu3 %v524_v39  ;;  %v756_v39 = vsub.f32 1.0, %v384_v3 }
  0x3d   : > { %1284 = vmatmul.msk.f32.gmra.mxu0 %vm394_vm2, %v1737_v9  ;;  %1294 = vmatmul.msk.f32.gmra.mxu2 %vm394_vm2, %v1797_v25  ;;  %v770_v38 = vmul.f32 -1e+30, %v754_v36 }
  0x3f   : > { %688 = vperm.xlu2 %1409, %v378_v40   ;;  %v771_v40 = vmul.f32 -1e+30, %v755_v37 }
  0x43   : > { %698 = vperm.xlu1 %1408, %v1849_v41   ;;  %693 = vperm.xlu0 %1407, %v379_v42   ;;  %v772_v42 = vmul.f32 -1e+30, %v756_v39 }
  0x45   : > { %1285 = vmatmul.msk.f32.gmra.mxu0 %vm394_vm2, %v1742_v10  ;;  %1295 = vmatmul.msk.f32.gmra.mxu2 %vm394_vm2, %v1807_v27 }
  0x47   : > { %703 = vperm.xlu2 %1409, %v381_v47  }
  0x4b   : > { %781 = vperm.xlu1 %1408, %v759_v46   ;;  %776 = vperm.xlu0 %1407, %v758_v45   ;;  %v757_v45 = vsub.f32 1.0, %v385_v21 }
  0x4d   : > { %1286 = vmatmul.msk.f32.gmra.mxu0 %vm394_vm2, %v1747_v11  ;;  %1296 = vmatmul.msk.f32.gmra.mxu2 %vm394_vm2, %v1817_v29  ;;  %v773_v46 = vmul.f32 -1e+30, %v757_v45 }
  0x4f   : > { %786 = vperm.xlu2 %1409, %v760_v51  }
  0x53   : > { %796 = vperm.xlu1 %1408, %v762_v53   ;;  %791 = vperm.xlu0 %1407, %v761_v52  }
  0x55   : > { %1287 = vmatmul.msk.f32.gmra.mxu0 %vm394_vm2, %v1752_v12  ;;  %1297 = vmatmul.msk.f32.gmra.mxu2 %vm394_vm2, %v1824_v30 }
  0x57   : > { %801 = vperm.xlu2 %1409, %v763_v58  }
  0x5b   : > { %811 = vperm.xlu1 %1408, %v765_v60   ;;  %806 = vperm.xlu0 %1407, %v764_v61  }
  0x5d   : > { %1288 = vmatmul.msk.f32.gmra.mxu0 %vm394_vm2, %v1770_v17 }
  0x5f   : > { %708 = vperm.xlu2 %1409, %v382_v2  }
  0x63   : > { %718 = vperm.xlu1 %1408, %v384_v3   ;;  %713 = vperm.xlu0 %1407, %v383_v4  }
  0x65   : > { %1289 = vmatmul.msk.f32.gmra.mxu0 %vm394_vm2, %v1794_v24 }
  0x67   : > { %723 = vperm.xlu2 %1409, %v385_v21  }
  0x6b   : > { %821 = vperm.xlu1 %1408, %v767_v14   ;;  %816 = vperm.xlu0 %1407, %v766_v16  }
  0x6d   : > { %1290 = vmatmul.msk.f32.gmra.mxu0 %vm394_vm2, %v1804_v26 }
  0x6f   : > { %826 = vperm.xlu2 %1409, %v768_v31  }
  0x73   : > { %831 = vperm.xlu0 %1407, %v769_v33   ;;  %836 = vperm.xlu1 %1408, %v770_v38  }
  0x75   : > { %1291 = vmatmul.msk.f32.gmra.mxu0 %vm394_vm2, %v1814_v28 }
  0x77   : > { %841 = vperm.xlu2 %1409, %v771_v40  }
  0x7b   : > { %846 = vperm.xlu0 %1407, %v772_v42   ;;  %851 = vperm.xlu1 %1408, %v773_v46  }
  0x9d   : > { %1017 = vxpose.xlu2.b32.start [1/16] (narrow) %v1727_v7, 32  ;;  %v1903_v22 = vpop.permute.xlu1 %658  ;;  %v649_v23 = vpop.permute.xlu0 %648 }
  0xa5   : > { %1018 = vxpose.xlu2.b32.cont [2/16] (narrow) %v1732_v8, 32  ;;  %v1907_v31 = vpop.permute.xlu1 %663 }
  0xaa   : > { %v460_v59 = vpop.f32.mrf.mxu0 }
  0xab   : > { %v461_v62 = vadd.f32 %v1860_v57, %v460_v59 }
  0xad   : > { %1411 = vtanh.f32 %v461_v62  ;;  %1019 = vxpose.xlu2.b32.cont [3/16] (narrow) %v1737_v9, 32 }
  0xb0   : > { %v490_v58 = vpop.f32.mrf.mxu2 }
  0xb2   : > { %v463_v63 = vpop.f32.mrf.mxu0 }
  0xb3   : > { %v1412_v0 = vpop.eup %1411  ;;  %v464_v1 = vadd.f32 %v1860_v57, %v463_v63 }
  0xb4   : > { %1298 = vmatmul.msk.f32.vlgmr.msra.gmra.mxu1 %vm532_vm3, %v1412_v0 }
  0xb5   : > { %1413 = vtanh.f32 %v464_v1  ;;  %v491_v1 = vadd.f32 %v1860_v57, %v490_v58  ;;  %1020 = vxpose.xlu2.b32.cont [4/16] (narrow) %v1742_v10, 32 }
  0xb8   : > { %v493_v0 = vpop.f32.mrf.mxu2 }
  0xb9   : > { %v494_v4 = vadd.f32 %v1860_v57, %v493_v0 }
  0xba   : > { %v466_v15 = vpop.f32.mrf.mxu0 }
  0xbb   : > { %v1414_v19 = vpop.eup %1413  ;;  %v467_v20 = vadd.f32 %v1860_v57, %v466_v15 }
  0xbc   : > { %1299 = vmatmul.msk.f32.gmra.mxu1 %vm532_vm3, %v1414_v19 }
  0xbd   : > { %1415 = vtanh.f32 %v467_v20  ;;  %1021 = vxpose.xlu2.b32.cont [5/16] (narrow) %v1747_v11, 32 }
  0xc0   : > { %v496_v3 = vpop.f32.mrf.mxu2 }
  0xc1   : > { %v497_v7 = vadd.f32 %v1860_v57, %v496_v3 }
  0xc2   : > { %v469_v32 = vpop.f32.mrf.mxu0 }
  0xc3   : > { %v1416_v34 = vpop.eup %1415  ;;  %v470_v35 = vadd.f32 %v1860_v57, %v469_v32  ;;  %v654_v32 = vpop.permute.xlu0 %653 }
  0xc4   : > { %1300 = vmatmul.msk.f32.gmra.mxu1 %vm532_vm3, %v1416_v34 }
  0xc5   : > { %1417 = vtanh.f32 %v470_v35  ;;  %1022 = vxpose.xlu2.b32.cont [6/16] (narrow) %v1752_v12, 32 }
  0xc8   : > { %v499_v6 = vpop.f32.mrf.mxu2 }
  0xc9   : > { %v500_v8 = vadd.f32 %v1860_v57, %v499_v6 }
  0xca   : > { %v472_v41 = vpop.f32.mrf.mxu0 }
  0xcb   : > { %v1418_v43 = vpop.eup %1417  ;;  %v473_v44 = vadd.f32 %v1860_v57, %v472_v41 }
  0xcc   : > { %1301 = vmatmul.msk.f32.gmra.mxu1 %vm532_vm3, %v1418_v43 }
  0xcd   : > { %1419 = vtanh.f32 %v473_v44  ;;  %1023 = vxpose.xlu2.b32.cont [7/16] (narrow) %v1770_v17, 32  ;;  %v1915_v17 = vpop.permute.xlu0 %678 }
  0xd0   : > { %v502_v16 = vpop.f32.mrf.mxu2 }
  0xd1   : > { %v503_v9 = vadd.f32 %v1860_v57, %v502_v16 }
  0xd2   : > { %v475_v47 = vpop.f32.mrf.mxu0 }
  0xd3   : > { %v1420_v48 = vpop.eup %1419  ;;  %v476_v49 = vadd.f32 %v1860_v57, %v475_v47 }
  0xd4   : > { %1302 = vmatmul.msk.f32.gmra.mxu1 %vm532_vm3, %v1420_v48 }
  0xd5   : > { %1421 = vtanh.f32 %v476_v49  ;;  %1024 = vxpose.xlu2.b32.cont [8/16] (narrow) %v1794_v24, 32  ;;  %v669_v24 = vpop.permute.xlu2 %668  ;;  %v694_v36 = vpop.permute.xlu0 %693 }
  0xd8   : > { %v505_v10 = vpop.f32.mrf.mxu2 }
  0xd9   : > { %v506_v20 = vadd.f32 %v1860_v57, %v505_v10 }
  0xda   : > { %v478_v50 = vpop.f32.mrf.mxu0 }
  0xdb   : > { %v1422_v51 = vpop.eup %1421  ;;  %v479_v52 = vadd.f32 %v1860_v57, %v478_v50 }
  0xdc   : > { %1303 = vmatmul.msk.f32.gmra.mxu1 %vm532_vm3, %v1422_v51 }
  0xdd   : > { %1423 = vtanh.f32 %v479_v52  ;;  %1025 = vxpose.xlu2.b32.cont [9/16] (narrow) %v1804_v26, 32  ;;  %v674_v39 = vpop.permute.xlu2 %673  ;;  %v777_v40 = vpop.permute.xlu0 %776 }
  0xe2   : > { %v481_v53 = vpop.f32.mrf.mxu0 }
  0xe3   : > { %v1424_v54 = vpop.eup %1423  ;;  %v482_v55 = vadd.f32 %v1860_v57, %v481_v53 }
  0xe4   : > { %1304 = vmatmul.msk.f32.gmra.mxu1 %vm532_vm3, %v1424_v54 }
  0xe5   : > { %1425 = vtanh.f32 %v482_v55  ;;  %1026 = vxpose.xlu2.b32.cont [10/16] (narrow) %v1814_v28, 32  ;;  %v689_v46 = vpop.permute.xlu2 %688  ;;  %v792_v50 = vpop.permute.xlu0 %791 }
  0xea   : > { %v484_v56 = vpop.f32.mrf.mxu0 }
  0xeb   : > { %v1426_v59 = vpop.eup %1425  ;;  %v485_v60 = vadd.f32 %v1860_v57, %v484_v56 }
  0xec   : > { %1305 = vmatmul.msk.f32.gmra.mxu1 %vm532_vm3, %v1426_v59 }
  0xed   : > { %1427 = vtanh.f32 %v485_v60  ;;  %1027 = vxpose.xlu2.b32.cont [11/16] (narrow) %v1757_v13, 32  ;;  %v704_v47 = vpop.permute.xlu2 %703  ;;  %v807_v55 = vpop.permute.xlu0 %806 }
  0xf2   : > { %v487_v61 = vpop.f32.mrf.mxu0 }
  0xf3   : > { %v1428_v62 = vpop.eup %1427  ;;  %v488_v63 = vadd.f32 %v1860_v57, %v487_v61  ;;  %v1912_v57 = vpop.permute.xlu1 %683 }
  0xf4   : > { %1306 = vmatmul.msk.f32.gmra.mxu1 %vm532_vm3, %v1428_v62 }
  0xf5   : > { %1429 = vtanh.f32 %v488_v63  ;;  %1028 = vxpose.xlu2.b32.cont [12/16] (narrow) %v1773_v18, 32  ;;  %v787_v48 = vpop.permute.xlu2 %786  ;;  %v714_v61 = vpop.permute.xlu0 %713 }
  0xf6   : > { %1431 = vtanh.f32 %v491_v1 }
  0xf7   : > { %1433 = vtanh.f32 %v494_v4 }
  0xf8   : > { %1435 = vtanh.f32 %v497_v7 }
  0xf9   : > { %1437 = vtanh.f32 %v500_v8 }
  0xfa   : > { %1439 = vtanh.f32 %v503_v9 }
  0xfb   : > { %v1430_v2 = vpop.eup %1429  ;;  %1441 = vtanh.f32 %v506_v20  ;;  %v1917_v34 = vpop.permute.xlu1 %698 }
  0xfc   : > { %1307 = vmatmul.msk.f32.vlgmr.msra.gmra.mxu3 %vm532_vm3, %v1430_v2  ;;  %v1432_v5 = vpop.eup %1431 }
  0xfd   : > { %v1434_v14 = vpop.eup %1433  ;;  %1029 = vxpose.xlu2.b32.cont [13/16] (narrow) %v1797_v25, 32  ;;  %v802_v25 = vpop.permute.xlu2 %801 }
  0xfe   : > { %v1436_v15 = vpop.eup %1435  ;;  %v817_v4 = vpop.permute.xlu0 %816 }
  0xff   : > { %v1438_v19 = vpop.eup %1437 }
 0x100   : > { %v1440_v21 = vpop.eup %1439 }
 0x101   : > { %v1442_v11 = vpop.eup %1441 }
 0x103   : > { %v782_v37 = vpop.permute.xlu1 %781 }
 0x104   : > { %1308 = vmatmul.msk.f32.gmra.mxu3 %vm532_vm3, %v1432_v5 }
 0x105   : > { %1030 = vxpose.xlu2.b32.cont [14/16] (narrow) %v1807_v27, 32  ;;  %v709_v54 = vpop.permute.xlu2 %708 }
 0x10b   : > { %v797_v43 = vpop.permute.xlu1 %796 }
 0x10c   : > { %1309 = vmatmul.msk.f32.gmra.mxu3 %vm532_vm3, %v1434_v14 }
 0x10d   : > { %1031 = vxpose.xlu2.b32.cont [15/16] (narrow) %v1817_v29, 32  ;;  %v724_v60 = vpop.permute.xlu2 %723 }
 0x113   : > { %v812_v51 = vpop.permute.xlu1 %811 }
 0x114   : > { %1310 = vmatmul.msk.f32.gmra.mxu3 %vm532_vm3, %v1436_v15 }
 0x115   : > { %1032 = vxpose.xlu2.b32.end [16/16] (narrow) %v1824_v30, 32  ;;  %v827_v0 = vpop.permute.xlu2 %826 }
 0x11b   : > { %v719_v58 = vpop.permute.xlu1 %718 }
 0x11c   : > { %1311 = vmatmul.msk.f32.gmra.mxu3 %vm532_vm3, %v1438_v19 }
 0x123   : > { %v822_v62 = vpop.permute.xlu1 %821 }
 0x124   : > { %1312 = vmatmul.msk.f32.gmra.mxu3 %vm532_vm3, %v1440_v21 }
 0x12b   : > { %v837_v15 = vpop.permute.xlu1 %836 }
 0x12c   : > { %1313 = vmatmul.msk.f32.gmra.mxu3 %vm532_vm3, %v1442_v11 }
 0x131   : > { %v598_v12 = vpop.f32.mrf.mxu1 }
 0x132   : > { %v726_v26 = vmul.f32 %v649_v23, %v598_v12  ;;  %v842_v23 = vpop.permute.xlu2 %841 }
 0x134   : > { %v1925_v28 = vadd.f32 %v777_v40, %v726_v26 }
 0x136   : > { %v872_v13 = vsel %vm871_vm4, %v1925_v28, -inf }
 0x139   : > { %v601_v33 = vpop.f32.mrf.mxu1 }
 0x13a   : > { %v727_v1 = vmul.f32 %v654_v32, %v601_v33 }
 0x13c   : > { %v1939_v6 = vadd.f32 %v782_v37, %v727_v1 }
 0x13e   : > { %v873_v10 = vsel %vm871_vm4, %v1939_v6, -inf }
 0x141   : > { %v1919_v35 = vpop.f32.mrf.mxu1 }
 0x149   : > { %v1922_v38 = vpop.f32.mrf.mxu1 }
 0x151   : > { %v610_v41 = vpop.f32.mrf.mxu1 }
 0x152   : > { %v730_v42 = vmul.f32 %v669_v24, %v610_v41  ;;  %v832_v24 = vpop.permute.xlu0 %831 }
 0x154   : > { %v1928_v44 = vadd.f32 %v797_v43, %v730_v42  ;;  %v728_v43 = vmul.f32 %v1903_v22, %v1919_v35 }
 0x156   : > { %v876_v45 = vsel %vm871_vm4, %v1928_v44, -inf }
 0x157   : > { %v877_v18 = vmax.f32 %v872_v13, %v876_v45 }
 0x159   : > { %v613_v49 = vpop.f32.mrf.mxu1 }
 0x15a   : > { %v731_v63 = vmul.f32 %v674_v39, %v613_v49  ;;  %v847_v22 = vpop.permute.xlu0 %846 }
 0x15c   : > { %v1937_v5 = vadd.f32 %v802_v25, %v731_v63 }
 0x15e   : > { %v878_v16 = vsel %vm871_vm4, %v1937_v5, -inf }
 0x15f   : > { %v879_v12 = vmax.f32 %v873_v10, %v878_v16 }
 0x161   : > { %v616_v53 = vpop.f32.mrf.mxu1 }
 0x162   : > { %v732_v41 = vmul.f32 %v1915_v17, %v616_v53 }
 0x164   : > { %v1965_v25 = vadd.f32 %v807_v55, %v732_v41 }
 0x166   : > { %v880_v35 = vsel %vm871_vm4, %v1965_v25, -inf }
 0x169   : > { %v619_v59 = vpop.f32.mrf.mxu1 }
 0x16a   : > { %v733_v42 = vmul.f32 %v1912_v57, %v619_v59 }
 0x171   : > { %v622_v29 = vpop.f32.mrf.mxu1 }
 0x172   : > { %v734_v2 = vmul.f32 %v689_v46, %v622_v29  ;;  %v729_v46 = vmul.f32 %v1907_v31, %v1922_v38 }
 0x174   : > { %v1941_v14 = vadd.f32 %v817_v4, %v734_v2  ;;  %v1971_v17 = vadd.f32 %v792_v50, %v729_v46 }
 0x176   : > { %v884_v20 = vsel %vm871_vm4, %v1941_v14, -inf }
 0x17f   : > { %v625_v52 = vpop.f32.mrf.mxu3 }
 0x180   : > { %v735_v3 = vmul.f32 %v694_v36, %v625_v52  ;;  %v885_v36 = vmax.f32 %v877_v18, %v884_v20  ;;  %v1967_v52 = vadd.f32 %v812_v51, %v733_v42 }
 0x182   : > { %v1943_v8 = vadd.f32 %v822_v62, %v735_v3  ;;  %v882_v31 = vsel %vm871_vm4, %v1967_v52, -inf }
 0x184   : > { %v886_v21 = vsel %vm871_vm4, %v1943_v8, -inf }
 0x185   : > { %v887_v37 = vmax.f32 %v879_v12, %v886_v21 }
 0x187   : > { %v628_v56 = vpop.f32.mrf.mxu3 }
 0x188   : > { %v736_v49 = vmul.f32 %v1917_v34, %v628_v56  ;;  %v852_v56 = vpop.permute.xlu1 %851 }
 0x18a   : > { %v864_v57 = vadd.f32 %v827_v0, %v736_v49 }
 0x18c   : > { %v888_v50 = vsel %vm871_vm4, %v864_v57, -inf }
 0x18f   : > { %v631_v27 = vpop.f32.mrf.mxu3 }
 0x190   : > { %v737_v18 = vmul.f32 %v704_v47, %v631_v27 }
 0x192   : > { %v865_v53 = vadd.f32 %v832_v24, %v737_v18 }
 0x194   : > { %v890_v51 = vsel %vm871_vm4, %v865_v53, -inf }
 0x197   : > { %v634_v30 = vpop.f32.mrf.mxu3 }
 0x198   : > { %v738_v7 = vmul.f32 %v709_v54, %v634_v30 }
 0x19a   : > { %v1947_v9 = vadd.f32 %v837_v15, %v738_v7 }
 0x19c   : > { %v892_v32 = vsel %vm871_vm4, %v1947_v9, -inf }
 0x19d   : > { %v893_v39 = vmax.f32 %v885_v36, %v892_v32 }
 0x19f   : > { %v637_v19 = vpop.f32.mrf.mxu3 }
 0x1a0   : > { %v739_v11 = vmul.f32 %v714_v61, %v637_v19  ;;  %v1969_v61 = vadd.f32 %v787_v48, %v728_v43  ;;  %v875_v48 = vsel %vm871_vm4, %v1971_v17, -inf }
 0x1a1   : > { %v883_v59 = vmax.f32 %v875_v48, %v882_v31 }
 0x1a2   : > { %v867_v33 = vadd.f32 %v842_v23, %v739_v11  ;;  %v874_v38 = vsel %vm871_vm4, %v1969_v61, -inf }
 0x1a3   : > { %v891_v63 = vmax.f32 %v883_v59, %v890_v51 }
 0x1a4   : > { %v894_v26 = vsel %vm871_vm4, %v867_v33, -inf }
 0x1a5   : > { %v895_v40 = vmax.f32 %v887_v37, %v894_v26 }
 0x1a7   : > { %v900_v13 = vmax.f32 %v893_v39, %v895_v40  ;;  %v640_v45 = vpop.f32.mrf.mxu3 }
 0x1a8   : > { %v740_v54 = vmul.f32 %v719_v58, %v640_v45  ;;  %v881_v58 = vmax.f32 %v874_v38, %v880_v35 }
 0x1aa   : > { %v868_v34 = vadd.f32 %v847_v22, %v740_v54  ;;  %v889_v29 = vmax.f32 %v881_v58, %v888_v50 }
 0x1ac   : > { %v896_v27 = vsel %vm871_vm4, %v868_v34, -inf }
 0x1ad   : > { %v897_v30 = vmax.f32 %v889_v29, %v896_v27 }
 0x1af   : > { %v643_v47 = vpop.f32.mrf.mxu3 }
 0x1b0   : > { %v741_v55 = vmul.f32 %v724_v60, %v643_v47  ;;  %v1985_v60 = vld [vmem:[#allocation2] sm:$0x1] }
 0x1b2   : > { %v869_v62 = vadd.f32 %v852_v56, %v741_v55 }
 0x1b4   : > { %v898_v0 = vsel %vm871_vm4, %v869_v62, -inf }
 0x1b5   : > { %v899_v1 = vmax.f32 %v891_v63, %v898_v0 }
 0x1b7   : > { %v901_v2 = vmax.f32 %v897_v30, %v899_v1 }
 0x1b9   : > { %v902_v3 = vmax.f32 %v900_v13, %v901_v2 }
 0x1bb   : > { %v903_v4 = vrot.slane %v902_v3, 4 }
 0x1bd   : > { %v904_v7 = vmax.f32 %v902_v3, %v903_v4 }
 0x1bf   : > { %v905_v15 = vrot.slane %v904_v7, 2 }
 0x1c1   : > { %v906_v16 = vmax.f32 %v904_v7, %v905_v15  ;;  %v1033_v7 = vpop.trf.xlu2 }
 0x1c3   : > { %v907_v19 = vrot.slane %v906_v16, 1 }
 0x1c5   : > { %v908_v10 = vmax.f32 %v906_v16, %v907_v19 }
 0x1c7   : > { %v1988_v20 = vmax.f32 %v1985_v60, %v908_v10 }
 0x1c9   : > { %v914_v21 = vperm.slane %v1988_v20, 0  ;;  %1086 = vst.msk [vmem:[#allocation2] sm:$0x1] %vm1004_vm5, %v1988_v20 }
 0x1cb   : > { %v931_v11 = vsub.f32 %v869_v62, %v914_v21  ;;  %v930_v23 = vsub.f32 %v868_v34, %v914_v21  ;;  %v929_v12 = vsub.f32 %v867_v33, %v914_v21  ;;  %v928_v36 = vsub.f32 %v1947_v9, %v914_v21 }
 0x1cc   : > { %v927_v26 = vsub.f32 %v865_v53, %v914_v21  ;;  %v926_v39 = vsub.f32 %v864_v57, %v914_v21  ;;  %v920_v40 = vsub.f32 %v1928_v44, %v914_v21  ;;  %v919_v42 = vsub.f32 %v1971_v17, %v914_v21 }
 0x1cd   : > { %v962_v32 = vmul.f32 1.442695, %v931_v11  ;;  %v960_v24 = vmul.f32 1.442695, %v930_v23  ;;  %v958_v37 = vmul.f32 1.442695, %v929_v12  ;;  %v917_v43 = vsub.f32 %v1939_v6, %v914_v21 }
 0x1ce   : > { %v956_v41 = vmul.f32 1.442695, %v928_v36  ;;  %v925_v13 = vsub.f32 %v1943_v8, %v914_v21  ;;  %v916_v33 = vsub.f32 %v1925_v28, %v914_v21  ;;  %v954_v45 = vmul.f32 1.442695, %v927_v26 }
 0x1cf   : > { %1443 = vpow2.f32 %v962_v32  ;;  %v924_v9 = vsub.f32 %v1941_v14, %v914_v21  ;;  %v918_v46 = vsub.f32 %v1969_v61, %v914_v21  ;;  %v952_v44 = vmul.f32 1.442695, %v926_v39 }
 0x1d0   : > { %1445 = vpow2.f32 %v960_v24  ;;  %v950_v18 = vmul.f32 1.442695, %v925_v13  ;;  %v923_v8 = vsub.f32 %v1967_v52, %v914_v21  ;;  %v922_v14 = vsub.f32 %v1965_v25, %v914_v21 }
 0x1d1   : > { %1447 = vpow2.f32 %v958_v37  ;;  %v948_v6 = vmul.f32 1.442695, %v924_v9  ;;  %v936_v28 = vmul.f32 1.442695, %v918_v46  ;;  %v934_v61 = vmul.f32 1.442695, %v917_v43  ;;  %v1034_v37 = vpop.trf.xlu2 }
 0x1d2   : > { %1449 = vpow2.f32 %v956_v41  ;;  %v932_v57 = vmul.f32 1.442695, %v916_v33  ;;  %v946_v22 = vmul.f32 1.442695, %v923_v8  ;;  %v921_v35 = vsub.f32 %v1937_v5, %v914_v21 }
 0x1d3   : > { %1451 = vpow2.f32 %v954_v45  ;;  %v938_v52 = vmul.f32 1.442695, %v919_v42  ;;  %v944_v34 = vmul.f32 1.442695, %v922_v14  ;;  %v940_v25 = vmul.f32 1.442695, %v920_v40 }
 0x1d4   : > { %1453 = vpow2.f32 %v952_v44  ;;  %v942_v47 = vmul.f32 1.442695, %v921_v35  ;;  %v910_v33 = vsub.f32 %v1985_v60, %v1988_v20  ;;  %v964_v60 = vld [vmem:[#allocation3] sm:$0x1] }
 0x1d5   : > { %v2001_v49 = vpop.eup %1443  ;;  %1455 = vpow2.f32 %v950_v18 }
 0x1d6   : > { %1049 = vmatpush.msrb.mxu2 %v2001_v49  ;;  %v2004_v54 = vpop.eup %1445  ;;  %1457 = vpow2.f32 %v948_v6  ;;  %v995_v18 = vsel %vm871_vm4, %v2001_v49, 0.0  ;;  %v911_v6 = vmul.f32 1.442695, %v910_v33  ;;  %v1006_v49 = vld [vmem:[#allocation4] sm:$0xff] }
 0x1d7   : > { %v2008_v17 = vpop.eup %1447  ;;  %1459 = vpow2.f32 %v936_v28  ;;  %v993_v9 = vsel %vm871_vm4, %v2004_v54, 0.0 }
 0x1d8   : > { %1050 = vmatpush.msrb.mxu2 %v2004_v54  ;;  %v2012_v53 = vpop.eup %1449  ;;  %1461 = vpow2.f32 %v934_v61  ;;  %v991_v13 = vsel %vm871_vm4, %v2008_v17, 0.0 }
 0x1d9   : > { %v1452_v31 = vpop.eup %1451  ;;  %1463 = vpow2.f32 %v932_v57  ;;  %v989_v42 = vsel %vm871_vm4, %v2012_v53, 0.0  ;;  %v1035_v44 = vpop.trf.xlu2 }
 0x1da   : > { %1051 = vmatpush.msrb.mxu2 %v2008_v17  ;;  %v1454_v38 = vpop.eup %1453  ;;  %1465 = vpow2.f32 %v946_v22  ;;  %v987_v40 = vsel %vm871_vm4, %v1452_v31, 0.0 }
 0x1db   : > { %v1456_v48 = vpop.eup %1455  ;;  %1467 = vpow2.f32 %v938_v52  ;;  %v985_v26 = vsel %vm871_vm4, %v1454_v38, 0.0 }
 0x1dc   : > { %1052 = vmatpush.msrb.mxu2 %v2012_v53  ;;  %v1458_v50 = vpop.eup %1457  ;;  %1469 = vpow2.f32 %v944_v34  ;;  %v983_v24 = vsel %vm871_vm4, %v1456_v48, 0.0 }
 0x1dd   : > { %v1460_v51 = vpop.eup %1459  ;;  %1471 = vpow2.f32 %v940_v25  ;;  %v981_v12 = vsel %vm871_vm4, %v1458_v50, 0.0 }
 0x1de   : > { %1053 = vmatpush.msrb.mxu2 %v1452_v31  ;;  %v1462_v5 = vpop.eup %1461  ;;  %1473 = vpow2.f32 %v942_v47  ;;  %v969_v63 = vsel %vm871_vm4, %v1460_v51, 0.0 }
 0x1df   : > { %v1464_v55 = vpop.eup %1463  ;;  %v967_v56 = vsel %vm871_vm4, %v1462_v5, 0.0  ;;  %1475 = vpow2.f32 %v911_v6 }
 0x1e0   : > { %1054 = vmatpush.msrb.mxu2 %v1454_v38  ;;  %v1466_v58 = vpop.eup %1465  ;;  %v966_v59 = vsel %vm871_vm4, %v1464_v55, 0.0  ;;  %v1007_v38 = vld [vmem:[#allocation4 + $0x8] sm:$0xff] }
 0x1e1   : > { %v1468_v27 = vpop.eup %1467  ;;  %v968_v62 = vadd.f32 %v967_v56, %v966_v59  ;;  %v979_v11 = vsel %vm871_vm4, %v1466_v58, 0.0  ;;  %v1036_v57 = vpop.trf.xlu2 }
 0x1e2   : > { %1055 = vmatpush.msrb.mxu2 %v1456_v48  ;;  %v1470_v29 = vpop.eup %1469  ;;  %v971_v2 = vsel %vm871_vm4, %v1468_v27, 0.0 }
 0x1e3   : > { %v1472_v0 = vpop.eup %1471  ;;  %v970_v30 = vadd.f32 %v969_v63, %v968_v62  ;;  %v977_v10 = vsel %vm871_vm4, %v1470_v29, 0.0 }
 0x1e4   : > { %1056 = vmatpush.msrb.mxu2 %v1458_v50  ;;  %v1474_v1 = vpop.eup %1473  ;;  %v973_v4 = vsel %vm871_vm4, %v1472_v0, 0.0 }
 0x1e5   : > { %v972_v3 = vadd.f32 %v971_v2, %v970_v30  ;;  %v975_v16 = vsel %vm871_vm4, %v1474_v1, 0.0  ;;  %v1476_v53 = vpop.eup %1475 }
 0x1e6   : > { %1057 = vmatpush.msrb.mxu2 %v1466_v58  ;;  %v965_v54 = vmul.f32 %v1476_v53, %v964_v60  ;;  %v1011_v52 = vperm.slane %v1476_v53, 0  ;;  %v1009_v58 = vld [vmem:[#allocation4 + $0x18] sm:$0xff] }
 0x1e7   : > { %v974_v15 = vadd.f32 %v973_v4, %v972_v3 }
 0x1e8   : > { %1058 = vmatpush.msrb.mxu2 %v1470_v29  ;;  %v1013_v31 = vmul.f32 %v1011_v52, %v1006_v49  ;;  %v1014_v47 = vmul.f32 %v1011_v52, %v1007_v38  ;;  %v1016_v59 = vmul.f32 %v1011_v52, %v1009_v58 }
 0x1e9   : > { %v976_v19 = vadd.f32 %v975_v16, %v974_v15 }
 0x1ea   : > { %1059 = vmatpush.msrb.mxu2 %v1474_v1 }
 0x1eb   : > { %v978_v21 = vadd.f32 %v977_v10, %v976_v19 }
 0x1ec   : > { %1060 = vmatpush.msrb.mxu2 %v1472_v0 }
 0x1ed   : > { %v980_v23 = vadd.f32 %v979_v11, %v978_v21 }
 0x1ee   : > { %1061 = vmatpush.msrb.mxu2 %v1468_v27 }
 0x1ef   : > { %v982_v32 = vadd.f32 %v981_v12, %v980_v23 }
 0x1f0   : > { %1062 = vmatpush.msrb.mxu2 %v1460_v51  ;;  %v1008_v51 = vld [vmem:[#allocation4 + $0x10] sm:$0xff] }
 0x1f1   : > { %v984_v36 = vadd.f32 %v983_v24, %v982_v32 }
 0x1f2   : > { %1063 = vmatpush.msrb.mxu2 %v1462_v5  ;;  %v1015_v5 = vmul.f32 %v1011_v52, %v1008_v51 }
 0x1f3   : > { %v986_v39 = vadd.f32 %v985_v26, %v984_v36 }
 0x1f4   : > { %1064 = vmatpush.msrb.mxu2 %v1464_v55 }
 0x1f5   : > { %1065 = vmatmul.f32.vlgmr.msrb.gmra.mxu2 %v1033_v7  ;;  %v988_v41 = vadd.f32 %v987_v40, %v986_v39 }
 0x1f7   : > { %v990_v43 = vadd.f32 %v989_v42, %v988_v41 }
 0x1f9   : > { %v992_v45 = vadd.f32 %v991_v13, %v990_v43 }
 0x1fb   : > { %v994_v46 = vadd.f32 %v993_v9, %v992_v45 }
 0x1fd   : > { %1068 = vmatmul.f32.gmra.mxu2 %v1034_v37  ;;  %v996_v8 = vadd.f32 %v995_v18, %v994_v46 }
 0x1ff   : > { %v997_v28 = vrot.slane %v996_v8, 4 }
 0x201   : > { %v998_v14 = vadd.f32 %v997_v28, %v996_v8 }
 0x203   : > { %v999_v17 = vrot.slane %v998_v14, 2 }
 0x205   : > { %1071 = vmatmul.f32.gmra.mxu2 %v1035_v44  ;;  %v1000_v61 = vadd.f32 %v999_v17, %v998_v14 }
 0x207   : > { %v1001_v20 = vrot.slane %v1000_v61, 1 }
 0x209   : > { %v1002_v22 = vadd.f32 %v1001_v20, %v1000_v61 }
 0x20b   : > { %v1003_v35 = vadd.f32 %v1002_v22, %v965_v54 }
 0x20d   : > { %1074 = vmatmul.f32.gmra.mxu2 %v1036_v57  ;;  %1005 = vst.msk [vmem:[#allocation3] sm:$0x1] %vm1004_vm5, %v1003_v35 }
 0x278   : > { %v1066_v34 = vpop.f32.mrf.mxu2 }
 0x279   : > { %v1078_v25 = vadd.f32 %v1066_v34, %v1013_v31 }
 0x27b   : > { %1082 = vst.msk [vmem:[#allocation4] sm:$0xff] %vm871_vm4, %v1078_v25 }
 0x280   : > { %v1069_v48 = vpop.f32.mrf.mxu2 }
 0x281   : > { %v1079_v50 = vadd.f32 %v1069_v48, %v1014_v47 }
 0x283   : > { %1083 = vst.msk [vmem:[#allocation4 + $0x8] sm:$0xff] %vm871_vm4, %v1079_v50 }
 0x288   : > { %v1072_v55 = vpop.f32.mrf.mxu2 }
 0x289   : > { %v1080_v56 = vadd.f32 %v1072_v55, %v1015_v5 }
 0x28b   : > { %1084 = vst.msk [vmem:[#allocation4 + $0x10] sm:$0xff] %vm871_vm4, %v1080_v56 }
 0x28f   : > { %1090 = sbr.rel (%p1314_p1) target bundleno = 809 (0x329), region = 56 }
 0x290   : > { %v1075_v27 = vpop.f32.mrf.mxu2 }
 0x291   : > { %v1081_v62 = vadd.f32 %v1075_v27, %v1016_v59 }
 0x293   : > { %1085 = vst.msk [vmem:[#allocation4 + $0x18] sm:$0xff] %vm871_vm4, %v1081_v62 }
 0x294   : > { %v1119_v29 = vld [vmem:[%s2112_s5 + $0x10] sm:$0xff]  ;;  %v1117_v63 = vld [vmem:[%s2112_s5] sm:$0xff]  ;;  %v1582_v0 = vmov 0   ;;  %v1120_v1 = vld [vmem:[%s2112_s5 + $0x18] sm:$0xff] }
 0x295   : > { %1478 = vset.pattern.permute.xlu1 %v1582_v0  ;;  %1477 = vset.pattern.permute.xlu0 %v1582_v0  ;;  %v1158_v30 = vld [vmem:[#allocation5] sm:$0x1]  ;;  %v1118_v2 = vld [vmem:[%s2112_s5 + $0x8] sm:$0xff]  ;;  %v1480_v3 = vld [vmem:[#allocation3] ss:$0 sm:$0xff] }
 0x296   : > { %1133 = vperm.xlu1 %1478, %v1119_v29   ;;  %1123 = vperm.xlu0 %1477, %v1117_v63   ;;  %1481 = vrcp.f32 %v1480_v3  ;;  %vm1104_vm6 = vweird.f32 %v1480_v3  ;;  %v1110_v19 = vand.u32 2147483648, %v1480_v3  ;;  %v1108_v21 = vand.u32 2147483647, %v1480_v3  ;;  %v1091_v36 = vld [vmem:[#allocation4] sm:$0xff]  ;;  %v1093_v37 = vld [vmem:[#allocation4 + $0x10] sm:$0xff]  ;;  %v1092_v26 = vld [vmem:[#allocation4 + $0x8] sm:$0xff] }
 0x297   : > { %1479 = vset.pattern.permute.xlu2 %v1582_v0 }
 0x298   : > { %1161 = vperm.xlu2 %1479, %v1158_v30   ;;  %v1111_v11 = vor.u32 1.1754944e-38, %v1110_v19  ;;  %vm1109_vm9 = vcmp.eq.f32.partialorder %v1108_v21, 8.507059e+37 }
 0x29a   : > { %v1094_v40 = vld [vmem:[#allocation4 + $0x18] sm:$0xff] }
 0x29c   : > { %v1482_v4 = vpop.eup %1481 }
 0x29d   : > { %v1100_v7 = vmul.f32 %v1482_v4, %v1480_v3  ;;  %vm1105_vm7 = vweird.f32 %v1482_v4 }
 0x29e   : > { %1138 = vperm.xlu1 %1478, %v1120_v1   ;;  %1128 = vperm.xlu0 %1477, %v1118_v2   ;;  %vm1106_vm8 = vmor %vm1104_vm6, %vm1105_vm7 }
 0x29f   : > { %v1101_v15 = vsub.f32 1.0, %v1100_v7 }
 0x2a1   : > { %v1102_v16 = vmul.f32 %v1482_v4, %v1101_v15 }
 0x2a3   : > { %v1103_v10 = vadd.f32 %v1482_v4, %v1102_v16 }
 0x2a5   : > { %v1107_v23 = vsel %vm1106_vm8, %v1482_v4, %v1103_v10 }
 0x2a6   : > { %v1112_v32 = vsel %vm1109_vm9, %v1111_v11, %v1107_v23 }
 0x2a7   : > { %v1113_v39 = vmul.f32 %v1112_v32, %v1091_v36  ;;  %v1115_v41 = vmul.f32 %v1112_v32, %v1093_v37  ;;  %v1114_v42 = vmul.f32 %v1112_v32, %v1092_v26  ;;  %v1116_v13 = vmul.f32 %v1112_v32, %v1094_v40 }
 0x2f2   : > { %v1162_v20 = vpop.permute.xlu2 %1161 }
 0x2f3   : > { %v1164_v35 = vperm.slane %v1162_v20, 0 }
 0x308   : > { %v1134_v12 = vpop.permute.xlu1 %1133  ;;  %v1124_v24 = vpop.permute.xlu0 %1123 }
 0x309   : > { %v1141_v43 = vmul.f32 %v1124_v24, %v1113_v39  ;;  %v1143_v9 = vmul.f32 %v1134_v12, %v1115_v41 }
 0x30b   : > { %v1145_v44 = vsel %vm871_vm4, %v1141_v43, 0.0  ;;  %v1148_v28 = vsel %vm871_vm4, %v1143_v9, 0.0 }
 0x310   : > { %v1139_v33 = vpop.permute.xlu1 %1138  ;;  %v1129_v45 = vpop.permute.xlu0 %1128 }
 0x311   : > { %v1142_v46 = vmul.f32 %v1129_v45, %v1114_v42  ;;  %v1144_v18 = vmul.f32 %v1139_v33, %v1116_v13 }
 0x313   : > { %v1146_v6 = vsel %vm871_vm4, %v1142_v46, 0.0  ;;  %v1150_v17 = vsel %vm871_vm4, %v1144_v18, 0.0 }
 0x314   : > { %v1147_v8 = vadd.f32 %v1146_v6, %v1145_v44 }
 0x316   : > { %v1149_v14 = vadd.f32 %v1148_v28, %v1147_v8 }
 0x318   : > { %v1151_v61 = vadd.f32 %v1150_v17, %v1149_v14 }
 0x31a   : > { %v1152_v57 = vrot.slane %v1151_v61, 4 }
 0x31c   : > { %v1153_v53 = vadd.f32 %v1152_v57, %v1151_v61 }
 0x31e   : > { %v1154_v60 = vrot.slane %v1153_v53, 2 }
 0x320   : > { %v1155_v22 = vadd.f32 %v1154_v60, %v1153_v53 }
 0x322   : > { %v1156_v54 = vrot.slane %v1155_v22, 1 }
 0x324   : > { %v1157_v52 = vadd.f32 %v1156_v54, %v1155_v22 }
 0x326   : > { %v1165_v49 = vadd.f32 %v1164_v35, %v1157_v52 }
 0x328   : > { %1166 = vst.msk [vmem:[%s1711_s12] sm:$0x1] %vm1004_vm5, %v1165_v49 }
 0x329 PF: > { %s1176_s25 = scalar_lea.hbm %s2114_s7, %s1565_s30  ;;  %s1178_s6 = sshll.u32 %s1711_s12, 4  ;;  %s1179_s6 = int_to_ptr.vmem [resolvable:$true] %s1178_s6 }
 0x32a   : > { %s1180_s13 = sshll.u32 %s1176_s25, 4  ;;  %s1168_s16 = scalar_lea.sflag [#allocation7], %s320_s19  ;;  %s1181_s13 = int_to_ptr.hbm [resolvable:$true] %s1180_s13 }
 0x32b   : > { %s1497_s17 = sshra.s32 %s1181_s13, 4  ;;  %s1503_s29 = scalar_lea.hbm %s2114_s7, 2  ;;  %s1498_s17 = int_to_ptr.hbm [resolvable:$true] %s1497_s17 }
 0x32c   : > { %s1499_s11 = scalar_lea.hbm %s1498_s17, 1  ;;  %p1504_p6 = scmp.lt.s32.totalorder %s1498_s17, %s2114_s7 }
 0x32d   : > { %p1500_p2 = scmp.ne.s32.totalorder %s1498_s17, %s1499_s11  ;;  %p1505_p7 = scmp.lt.s32.totalorder %s1503_s29, %s1499_s11 }
 0x32f   : > { %p1501_p4 = pnand %p1500_p2, %p1675_p3  ;;  %p1506_p8 = por %p1505_p7, %p1504_p6 }
 0x331   : > { %p1502_p5 = pneg %p1501_p4 }
 0x333   : > { %p1507_p10 = pnand %p1506_p8, %p1502_p5 }
 0x335   : > { %1510 = shalt.err (!%p1507_p10)
}
 0x336   : > { %1332 = dma.vmem_to_hbm [thread:$0]  (%p1675_p3), %s1179_s6, 16, %s1181_s13, %s1168_s16  }
 0x337 PF: > { %p1338_p11 = scmp.ge.s32.totalorder %s1577_s10, 2  ;;  %s1192_s30 = sand.u32 1, %s1549_s26  }
 0x338   : > { %s1193_s12 = scalar_lea.sflag [#allocation7], %s1192_s30 }
 0x339   : > { %p1335_p12 = pnand %p1338_p11, %p1685_p9 }
 0x33b   : > { %p1336_p13 = pneg %p1335_p12 }
 0x33d   : > { %1544 = dma.done.wait (%p1336_p13), %s1193_s12, 16  }
 0x33e   : > { %1546 = vsyncadd (%p1336_p13), %s1193_s12, 4294967280  ;;  %s22_s10 = sadd.s32 1, %s1577_s10   ;;  %s2120_s14 = sld [smem:[#allocation9_spill]] }
 0x33f   : > { %p19_p0 = scmp.ge.s32.totalorder %s22_s10, 6   ;;  %s2121_s19 = sld [smem:[#allocation10_spill]] }
 0x340   : > { %s2122_s26 = smov %s1553_s27  ;;  %s2123_s27 = smov %s1557_s28 }
 0x341   : > { %s2124_s28 = smov %s1693_s18  ;;  %s2125_s29 = smov %s1569_s8 }
 0x342   : > { %s2126_s30 = smov %s1573_s9  ;;  %21 = sbr.rel (!%p19_p0) target bundleno = 8 (0x8), region = 94 }
 0x344   : > { %s2127_s8 = smov %s2120_s14 }
 0x345   : > { %s2128_s9 = smov %s2121_s19 }
 0x347   :  { %1198 = vsyncpa [#allocation7], 1 }
 0x348   :  { %1200 = vsyncpa [#allocation7 + $0x1], 1 }

</bundles_post_ra>
